<compile_context>
chip_gen: v6e
topology: v6e:2x2x1
jax: 0.10.0
libtpu: 0.0.40
codegen_flags: <defaults>
</compile_context>

<pallas_src>
import functools

import jax
import jax.numpy as jnp
from jax.experimental import pallas as pl
from jax.experimental.pallas import tpu as pltpu


def _round_up(x, m):
    return ((x + m - 1) // m) * m


_VMEM_LIMIT = 64 * 1024 * 1024  # raise scoped-VMEM default; <= v7x physical


# ----------------------------------------------------------------------------
# Kernel 1: per-edge messages. grid = (num_edge_tiles,). Each tile does ONE
# matmul with the relation weight selected by the scalar-prefetched
# tile -> relation table (data-dependent W index_map). Padded edge slots have
# norm == 0 so they contribute exactly zero. Output is bf16 (f32 accumulation).
# ----------------------------------------------------------------------------
def _msg_kernel(tile_rel_ref, h_ref, w_ref, norm_ref, msg_ref):
    del tile_rel_ref  # consumed by the index maps only
    msg = jnp.dot(h_ref[...], w_ref[0], preferred_element_type=jnp.float32)
    msg_ref[...] = (msg * norm_ref[...]).astype(msg_ref.dtype)   # -> bf16


def edge_messages(tile_rel, h_src, weight_full, norm, *, edge_tile):
    e_pad, in_feat = h_src.shape
    _, _, out_pad = weight_full.shape
    num_tiles = e_pad // edge_tile
    return pl.pallas_call(
        _msg_kernel,
        out_shape=jax.ShapeDtypeStruct((e_pad, out_pad), jnp.bfloat16),
        grid_spec=pltpu.PrefetchScalarGridSpec(
            num_scalar_prefetch=1,                       # tile_rel -> SMEM
            grid=(num_tiles,),
            in_specs=[
                pl.BlockSpec((edge_tile, in_feat), lambda i, tr: (i, 0)),
                pl.BlockSpec((1, in_feat, out_pad),
                             lambda i, tr: (tr[i], 0, 0)),   # W[rel_of_tile(i)]
                pl.BlockSpec((edge_tile, 1), lambda i, tr: (i, 0)),
            ],
            out_specs=pl.BlockSpec((edge_tile, out_pad), lambda i, tr: (i, 0)),
        ),
        compiler_params=pltpu.CompilerParams(
            dimension_semantics=("parallel",),
            vmem_limit_bytes=_VMEM_LIMIT),
    )(tile_rel, h_src, weight_full, norm)


# ----------------------------------------------------------------------------
# Kernel 2: dst aggregation (fn.sum) + self-loop + bias + ReLU.
# grid = (node_tiles, edge_steps). A scalar-prefetched per-node-tile table maps
# each inner step to an edge tile whose dst range intersects this node tile;
# steps past count[n] repeat the last index (no DMA) and skip compute.
# ----------------------------------------------------------------------------
def _agg_kernel(tbl_ref, cnt_ref, dst_ref, msg_ref, featd_ref, lw_ref, bias_ref,
                out_ref, acc_ref):
    n = pl.program_id(0)
    e = pl.program_id(1)

    @pl.when(e == 0)
    def _():  # self-loop + bias prologue (keeps the final-step epilogue short)
        loop = jnp.dot(featd_ref[...], lw_ref[...],
                       preferred_element_type=jnp.float32)
        acc_ref[...] = loop + bias_ref[...]

    @pl.when(e < cnt_ref[n])
    def _():  # only edge tiles whose dst range hits this node tile
        tn = acc_ref.shape[0]
        te = dst_ref.shape[1]
        node_ids = (n * tn
                    + jax.lax.broadcasted_iota(jnp.int32, (tn, te), 0))
        # int32 compare (f32/int VPU path), cast to bf16 only for the MXU
        one_hot = (node_ids == dst_ref[...]).astype(jnp.bfloat16)
        acc_ref[...] += jnp.dot(one_hot, msg_ref[...],
                                preferred_element_type=jnp.float32)

    @pl.when(e == pl.num_programs(1) - 1)
    def _():
        out_ref[...] = jnp.maximum(acc_ref[...], 0.0).astype(out_ref.dtype)


def aggregate_and_finish(tile_table, tile_count, dst2d, msg, feat_dst,
                         loop_weight, bias2d, *, node_tile, edge_tile):
    n_pad, in_feat = feat_dst.shape
    e_pad, out_pad = msg.shape
    num_node_tiles = n_pad // node_tile
    num_edge_tiles = e_pad // edge_tile
    et = num_edge_tiles  # closed over by the index maps

    return pl.pallas_call(
        _agg_kernel,
        out_shape=jax.ShapeDtypeStruct((n_pad, out_pad), jnp.float32),
        grid_spec=pltpu.PrefetchScalarGridSpec(
            num_scalar_prefetch=2,                 # tile_table (flat), count
            grid=(num_node_tiles, num_edge_tiles),
            in_specs=[
                pl.BlockSpec((1, edge_tile),
                             lambda n, e, tbl, cnt: (0, tbl[n * et + e])),
                pl.BlockSpec((edge_tile, out_pad),
                             lambda n, e, tbl, cnt: (tbl[n * et + e], 0)),
                pl.BlockSpec((node_tile, in_feat),
                             lambda n, e, tbl, cnt: (n, 0)),
                pl.BlockSpec((in_feat, out_pad),
                             lambda n, e, tbl, cnt: (0, 0)),
                pl.BlockSpec((1, out_pad),
                             lambda n, e, tbl, cnt: (0, 0)),
            ],
            out_specs=pl.BlockSpec((node_tile, out_pad),
                                   lambda n, e, tbl, cnt: (n, 0)),
            scratch_shapes=[pltpu.VMEM((node_tile, out_pad), jnp.float32)],
        ),
        compiler_params=pltpu.CompilerParams(
            dimension_semantics=("parallel", "arbitrary"),
            vmem_limit_bytes=_VMEM_LIMIT),
    )(tile_table, tile_count, dst2d, msg, feat_dst, loop_weight, bias2d)


# ----------------------------------------------------------------------------
# Wrapper: full RelGraphConvHomo forward.
# ----------------------------------------------------------------------------
@functools.partial(jax.jit,
                   static_argnames=("n_dst", "edge_tile", "node_tile"))
def rel_graph_conv_homo(feat, edge_src, edge_dst, etypes, norm,
                        weight, w_comp, loop_weight, h_bias, *,
                        n_dst, edge_tile=512, node_tile=512):
    num_bases, in_feat, out_feat = weight.shape
    num_rels = w_comp.shape[0]
    E = edge_src.shape[0]
    cdt = jnp.bfloat16  # MXU operand dtype; all accumulation stays f32

    # lane-dense output: pad out_feat to a multiple of 128, slice at the end
    out_pad = _round_up(out_feat, 128)
    # clamp tiles for small inputs; keep edge_tile %128==0 and node_tile %8==0
    # (for large graphs keep n_pad/node_tile >= 2 so both v7x TCs stay busy)
    edge_tile = max(128, (min(edge_tile, _round_up(E, 128)) // 128) * 128)
    node_tile = max(8, (min(node_tile, _round_up(n_dst, 8)) // 8) * 8)

    # 1. basis weight composition (parameter glue, plain JAX) + out padding
    weight_full = jnp.matmul(
        w_comp, weight.reshape(num_bases, in_feat * out_feat)
    ).reshape(num_rels, in_feat, out_feat)
    weight_full = jnp.pad(
        weight_full, ((0, 0), (0, 0), (0, out_pad - out_feat))).astype(cdt)

    # 2. sort edges by (relation, dst): keeps the low_mem relation-contiguity
    #    contract (and is robust to unsorted etypes), gives dst locality per
    #    relation for the aggregation pruning below.
    etypes = etypes.astype(jnp.int32)
    edge_src = edge_src.astype(jnp.int32)
    edge_dst = edge_dst.astype(jnp.int32)
    perm = jnp.argsort(edge_dst, stable=True)
    perm = perm[jnp.argsort(etypes[perm], stable=True)]
    etypes_s, src_s, dst_s = etypes[perm], edge_src[perm], edge_dst[perm]
    norm_s = norm.reshape(E, 1).astype(jnp.float32)[perm]

    # 3. pad each relation's block to a multiple of edge_tile so every edge
    #    tile maps to exactly one relation; padded slots: norm=0, dst=-1.
    sec = jnp.bincount(etypes_s, length=num_rels).astype(jnp.int32)
    starts = jnp.concatenate(
        [jnp.zeros((1,), jnp.int32), jnp.cumsum(sec)[:-1].astype(jnp.int32)])
    padded_counts = ((sec + edge_tile - 1) // edge_tile) * edge_tile
    padded_starts = jnp.concatenate(
        [jnp.zeros((1,), jnp.int32),
         jnp.cumsum(padded_counts)[:-1].astype(jnp.int32)])
    e_pad = _round_up(E + num_rels * (edge_tile - 1), edge_tile)  # static bound
    num_tiles = e_pad // edge_tile

    pos = jnp.arange(E, dtype=jnp.int32) - starts[etypes_s]   # rank within rel
    pidx = padded_starts[etypes_s] + pos                       # padded slot

    padded_src = jnp.zeros((e_pad,), jnp.int32).at[pidx].set(src_s)
    padded_dst = jnp.full((e_pad,), -1, jnp.int32).at[pidx].set(dst_s)
    padded_norm = jnp.zeros((e_pad, 1), jnp.float32).at[pidx].set(norm_s)
    tile_rel = jnp.clip(
        jnp.searchsorted(padded_starts,
                         jnp.arange(num_tiles, dtype=jnp.int32) * edge_tile,
                         side="right") - 1,
        0, num_rels - 1).astype(jnp.int32)

    # 4. per-edge messages; bf16 msg out, f32 accumulation inside.
    # TODO(synk): gather feat rows inside kernel 1 (manual per-row DMA) once
    #             in_feat is large (>= ~512) so the (e_pad, in_feat) slab is
    #             never materialized in HBM.
    h_src = feat.astype(cdt)[padded_src]
    msg = edge_messages(tile_rel, h_src, weight_full, padded_norm,
                        edge_tile=edge_tile)          # (e_pad, out_pad) bf16

    # 5. dst-locality tables: per-edge-tile [min_dst, max_dst], intersect with
    #    node tiles, compact intersecting tile ids to the front of each row.
    n_pad = _round_up(n_dst, node_tile)
    num_node_tiles = n_pad // node_tile
    d2 = padded_dst.reshape(num_tiles, edge_tile)
    v2 = d2 >= 0
    tile_lo = jnp.min(jnp.where(v2, d2, jnp.int32(2 ** 30)), axis=1)
    tile_hi = jnp.max(jnp.where(v2, d2, jnp.int32(-1)), axis=1)
    node_lo = jnp.arange(num_node_tiles, dtype=jnp.int32) * node_tile
    node_hi = node_lo + (node_tile - 1)
    intersect = ((tile_lo[None, :] <= node_hi[:, None]) &
                 (tile_hi[None, :] >= node_lo[:, None]))            # (NT, ET)
    tile_count = intersect.sum(axis=1).astype(jnp.int32)
    order = jnp.argsort(jnp.logical_not(intersect).astype(jnp.int32),
                        axis=1, stable=True).astype(jnp.int32)
    j = jnp.arange(num_tiles, dtype=jnp.int32)
    last_valid = order[jnp.arange(num_node_tiles),
                       jnp.maximum(tile_count - 1, 0)]
    tile_table = jnp.where(j[None, :] < tile_count[:, None],
                           order, last_valid[:, None])       # repeat -> no DMA
    tile_table = jnp.where(tile_count[:, None] == 0, 0, tile_table)
    tile_table = tile_table.reshape(-1).astype(jnp.int32)    # flat 1-D SMEM
    # TODO(synk): for very large graphs (NT*ET beyond the SMEM budget) fall
    #             back to per-node-tile [first,last] edge-tile ranges.

    # 6. aggregation + self-loop + bias + relu (padded params, sliced result)
    feat_dst = jnp.pad(feat[:n_dst], ((0, n_pad - n_dst), (0, 0))).astype(cdt)
    lw_pad = jnp.pad(loop_weight, ((0, 0), (0, out_pad - out_feat))).astype(cdt)
    bias2d = jnp.pad(h_bias, (0, out_pad - out_feat))[None, :].astype(jnp.float32)

    out = aggregate_and_finish(tile_table, tile_count,
                               padded_dst[None, :], msg, feat_dst,
                               lw_pad, bias2d,
                               node_tile=node_tile, edge_tile=edge_tile)
    # dropout(p=0.0) is identity; layer_norm=False (module defaults)
    return out[:n_dst, :out_feat]


# ----------------------------------------------------------------------------
# Pure-JAX reference (for correctness check).
# ----------------------------------------------------------------------------
def reference_forward(feat, edge_src, edge_dst, etypes, norm,
                      weight, w_comp, loop_weight, h_bias, n_dst,
                      compute_dtype=jnp.float32, round_msg=False):
    num_bases, in_feat, out_feat = weight.shape
    num_rels = w_comp.shape[0]
    weight_full = jnp.matmul(
        w_comp, weight.reshape(num_bases, in_feat * out_feat)
    ).reshape(num_rels, in_feat, out_feat).astype(compute_dtype)
    h_src = feat.astype(compute_dtype)[edge_src]
    msg = jnp.einsum("ei,eio->eo", h_src, weight_full[etypes],
                     preferred_element_type=jnp.float32) * norm
    if round_msg:
        msg = msg.astype(jnp.bfloat16).astype(jnp.float32)
    agg = jax.ops.segment_sum(msg, edge_dst, num_segments=n_dst)
    loop = jnp.dot(feat[:n_dst].astype(compute_dtype),
                   loop_weight.astype(compute_dtype),
                   preferred_element_type=jnp.float32)
    return jnp.maximum(agg + h_bias[None, :] + loop, 0.0)


def xavier_uniform(key, shape, fan_in, fan_out, gain):
    bound = gain * jnp.sqrt(6.0 / (fan_in + fan_out))
    return jax.random.uniform(key, shape, jnp.float32, -bound, bound)


if __name__ == "__main__":
    # small synthetic problem
    in_feat, out_feat = 32, 32
    num_rels, num_bases = 4, 2
    n_nodes = 64          # homogeneous graph: n_src == n_dst
    n_edges = 128

    key = jax.random.PRNGKey(0)
    k_feat, k_w, k_wc, k_lw, k_src, k_dst, k_et, k_norm = jax.random.split(key, 8)

    relu_gain = jnp.sqrt(2.0)  # nn.init.calculate_gain('relu')
    weight = xavier_uniform(k_w, (num_bases, in_feat, out_feat),
                            in_feat * out_feat, num_bases * out_feat, relu_gain)
    w_comp = xavier_uniform(k_wc, (num_rels, num_bases),
                            num_bases, num_rels, relu_gain)
    loop_weight = xavier_uniform(k_lw, (in_feat, out_feat),
                                 in_feat, out_feat, relu_gain)
    h_bias = jnp.zeros((out_feat,), jnp.float32)

    feat = jax.random.normal(k_feat, (n_nodes, in_feat), jnp.float32)
    edge_src = jax.random.randint(k_src, (n_edges,), 0, n_nodes)
    edge_dst = jax.random.randint(k_dst, (n_edges,), 0, n_nodes)
    # low_mem path assumes relation-sorted edges; wrapper re-sorts anyway
    etypes = jnp.sort(jax.random.randint(k_et, (n_edges,), 0, num_rels))
    norm = jax.random.uniform(k_norm, (n_edges, 1), jnp.float32, 0.1, 1.0)

    out = rel_graph_conv_homo(feat, edge_src, edge_dst, etypes, norm,
                              weight, w_comp, loop_weight, h_bias,
                              n_dst=n_nodes)
    out = jax.block_until_ready(out)
    assert out.shape == (n_nodes, out_feat)

    # matched-precision reference (bf16 operands, bf16 msg, f32 accumulation)
    ref_matched = reference_forward(feat, edge_src, edge_dst, etypes, norm,
                                    weight, w_comp, loop_weight, h_bias, n_nodes,
                                    compute_dtype=jnp.bfloat16, round_msg=True)
    # full f32 reference -> loose tol (bf16 operand + msg rounding)
    ref_f32 = reference_forward(feat, edge_src, edge_dst, etypes, norm,
                                weight, w_comp, loop_weight, h_bias, n_nodes,
                                compute_dtype=jnp.float32, round_msg=False)
    assert jnp.max(jnp.abs(out - ref_matched)) < 1e-2, "mismatch vs matched ref"
    assert jnp.max(jnp.abs(out - ref_f32)) < 2e-1, "mismatch vs f32 ref"

    print("KERNEL_OK")
</pallas_src>

<mosaic_0001>
module attributes {stable_mosaic.version = 11 : i64} {
  func.func private @main(%arg0: i32) attributes {dimension_semantics = [#tpu.dimension_semantics<core_parallel>], iteration_bounds = array<i64: 2>, tpu.core_type = #tpu.core_type<sc_scalar_subcore>, window_params = []} {
    return
  }
}

module attributes {stable_mosaic.version = 11 : i64} {
  func.func private @main(%arg0: i32) attributes {dimension_semantics = [#tpu.dimension_semantics<core_parallel>], iteration_bounds = array<i64: 2>, tpu.core_type = #tpu.core_type<sc_scalar_subcore>, window_params = []} {
    return
  }
}

module attributes {stable_mosaic.version = 11 : i64} {
  func.func @_msg_kernel(%arg0: i32, %arg1: memref<5xi32, #tpu.memory_space<smem>>, %arg2: memref<128x32xbf16, #tpu.memory_space<vmem>>, %arg3: memref<1x32x128xbf16, #tpu.memory_space<vmem>>, %arg4: memref<128x1xf32, #tpu.memory_space<vmem>>, %arg5: memref<128x128xbf16, #tpu.memory_space<vmem>>) attributes {dimension_semantics = [#tpu.dimension_semantics<parallel>], iteration_bounds = array<i64: 5>, scalar_prefetch = 1 : i64, scratch_operands = 0 : i64, tpu.core_type = #tpu.core_type<tc>, window_params = [{transform_indices = @transform_0, window_bounds = array<i64: 128, 32>}, {transform_indices = @transform_1, window_bounds = array<i64: 1, 32, 128>}, {transform_indices = @transform_2, window_bounds = array<i64: 128, 1>}, {transform_indices = @transform_3, window_bounds = array<i64: 128, 128>}]} {
    %c0 = arith.constant 0 : index
    %c0_0 = arith.constant 0 : index
    %0 = vector.load %arg2[%c0, %c0_0] : memref<128x32xbf16, #tpu.memory_space<vmem>>, vector<128x32xbf16>
    %c0_1 = arith.constant 0 : index
    %c0_2 = arith.constant 0 : index
    %c0_3 = arith.constant 0 : index
    %1 = vector.load %arg3[%c0_1, %c0_2, %c0_3] : memref<1x32x128xbf16, #tpu.memory_space<vmem>>, vector<1x32x128xbf16>
    %2 = vector.shape_cast %1 : vector<1x32x128xbf16> to vector<32x128xbf16>
    %cst = arith.constant dense<0.000000e+00> : vector<128x128xf32>
    %3 = tpu.matmul %0, %2, %cst {dimension_numbers = #tpu.dot_dimension_numbers<[1], [0], [0], [1], [0, 0, 1, 1], [], []>} : vector<128x32xbf16>, vector<32x128xbf16>, vector<128x128xf32> -> vector<128x128xf32>
    %c0_4 = arith.constant 0 : index
    %c0_5 = arith.constant 0 : index
    %4 = vector.load %arg4[%c0_4, %c0_5] : memref<128x1xf32, #tpu.memory_space<vmem>>, vector<128x1xf32>
    %5 = vector.broadcast %4 : vector<128x1xf32> to vector<128x128xf32>
    %6 = arith.mulf %3, %5 : vector<128x128xf32>
    %7 = arith.truncf %6 : vector<128x128xf32> to vector<128x128xbf16>
    %c0_6 = arith.constant 0 : index
    %c0_7 = arith.constant 0 : index
    %8 = vector.load %arg5[%c0_6, %c0_7] : memref<128x128xbf16, #tpu.memory_space<vmem>>, vector<128x128xbf16>
    tpu.vector_store %arg5[%c0_6, %c0_7], %7 {strides = array<i32>} : memref<128x128xbf16, #tpu.memory_space<vmem>>, vector<128x128xbf16>,
    return
  }
  func.func @transform_0(%arg0: i32, %arg1: memref<5xi32, #tpu.memory_space<smem>>) -> (i32, i32) {
    %c0_i32 = arith.constant 0 : i32
    %c0_i32_0 = arith.constant 0 : i32
    return %arg0, %c0_i32 : i32, i32
  }
  func.func @transform_1(%arg0: i32, %arg1: memref<5xi32, #tpu.memory_space<smem>>) -> (i32, i32, i32) {
    %0 = arith.index_cast %arg0 : i32 to index
    %1 = memref.load %arg1[%0] : memref<5xi32, #tpu.memory_space<smem>>
    %c0_i32 = arith.constant 0 : i32
    %c0_i32_0 = arith.constant 0 : i32
    %c0_i32_1 = arith.constant 0 : i32
    return %1, %c0_i32, %c0_i32_0 : i32, i32, i32
  }
  func.func @transform_2(%arg0: i32, %arg1: memref<5xi32, #tpu.memory_space<smem>>) -> (i32, i32) {
    %c0_i32 = arith.constant 0 : i32
    %c0_i32_0 = arith.constant 0 : i32
    return %arg0, %c0_i32 : i32, i32
  }
  func.func @transform_3(%arg0: i32, %arg1: memref<5xi32, #tpu.memory_space<smem>>) -> (i32, i32) {
    %c0_i32 = arith.constant 0 : i32
    %c0_i32_0 = arith.constant 0 : i32
    return %arg0, %c0_i32 : i32, i32
  }
}

module attributes {stable_mosaic.version = 11 : i64} {
  func.func @_agg_kernel(%arg0: i32, %arg1: i32, %arg2: memref<5xi32, #tpu.memory_space<smem>>, %arg3: memref<1xi32, #tpu.memory_space<smem>>, %arg4: memref<1x128xi32, #tpu.memory_space<vmem>>, %arg5: memref<128x128xbf16, #tpu.memory_space<vmem>>, %arg6: memref<64x32xbf16, #tpu.memory_space<vmem>>, %arg7: memref<32x128xbf16, #tpu.memory_space<vmem>>, %arg8: memref<1x128xf32, #tpu.memory_space<vmem>>, %arg9: memref<64x128xf32, #tpu.memory_space<vmem>>, %arg10: memref<64x128xf32, #tpu.memory_space<vmem>>) attributes {dimension_semantics = [#tpu.dimension_semantics<parallel>, #tpu.dimension_semantics<arbitrary>], iteration_bounds = array<i64: 1, 5>, scalar_prefetch = 2 : i64, scratch_operands = 1 : i64, tpu.core_type = #tpu.core_type<tc>, window_params = [{transform_indices = @transform_0, window_bounds = array<i64: 1, 128>}, {transform_indices = @transform_1, window_bounds = array<i64: 128, 128>}, {transform_indices = @transform_2, window_bounds = array<i64: 64, 32>}, {pipeline_mode = #tpu.pipeline_mode<synchronous>, transform_indices = @transform_3, window_bounds = array<i64: 32, 128>}, {pipeline_mode = #tpu.pipeline_mode<synchronous>, transform_indices = @transform_4, window_bounds = array<i64: 1, 128>}, {transform_indices = @transform_5, window_bounds = array<i64: 64, 128>}]} {
    %c0_i32 = arith.constant 0 : i32
    %0 = arith.cmpi eq, %arg1, %c0_i32 : i32
    %1 = arith.extui %0 : i1 to i32
    %c0_i32_0 = arith.constant 0 : i32
    %2 = arith.cmpi ne, %1, %c0_i32_0 : i32
    scf.if %2 {
      %c0 = arith.constant 0 : index
      %c0_3 = arith.constant 0 : index
      %11 = vector.load %arg6[%c0, %c0_3] : memref<64x32xbf16, #tpu.memory_space<vmem>>, vector<64x32xbf16>
      %c0_4 = arith.constant 0 : index
      %c0_5 = arith.constant 0 : index
      %12 = vector.load %arg7[%c0_4, %c0_5] : memref<32x128xbf16, #tpu.memory_space<vmem>>, vector<32x128xbf16>
      %cst = arith.constant dense<0.000000e+00> : vector<64x128xf32>
      %13 = tpu.matmul %11, %12, %cst {dimension_numbers = #tpu.dot_dimension_numbers<[1], [0], [0], [1], [0, 0, 1, 1], [], []>} : vector<64x32xbf16>, vector<32x128xbf16>, vector<64x128xf32> -> vector<64x128xf32>
      %c0_6 = arith.constant 0 : index
      %c0_7 = arith.constant 0 : index
      %14 = vector.load %arg8[%c0_6, %c0_7] : memref<1x128xf32, #tpu.memory_space<vmem>>, vector<1x128xf32>
      %15 = vector.broadcast %14 : vector<1x128xf32> to vector<64x128xf32>
      %16 = arith.addf %13, %15 : vector<64x128xf32>
      %c0_8 = arith.constant 0 : index
      %c0_9 = arith.constant 0 : index
      %17 = vector.load %arg10[%c0_8, %c0_9] : memref<64x128xf32, #tpu.memory_space<vmem>>, vector<64x128xf32>
      tpu.vector_store %arg10[%c0_8, %c0_9], %16 {strides = array<i32>} : memref<64x128xf32, #tpu.memory_space<vmem>>, vector<64x128xf32>,
    } else {
    }
    %3 = arith.index_cast %arg0 : i32 to index
    %4 = memref.load %arg3[%3] : memref<1xi32, #tpu.memory_space<smem>>
    %5 = arith.cmpi slt, %arg1, %4 : i32
    %6 = arith.extui %5 : i1 to i32
    %c0_i32_1 = arith.constant 0 : i32
    %7 = arith.cmpi ne, %6, %c0_i32_1 : i32
    scf.if %7 {
      %c64_i32 = arith.constant 64 : i32
      %11 = arith.muli %arg0, %c64_i32 : i32
      %12 = tpu.iota {dimensions = array<i32: 0>} : vector<64x128xi32>
      %13 = vector.broadcast %11 : i32 to vector<64x128xi32>
      %14 = arith.addi %13, %12 : vector<64x128xi32>
      %c0 = arith.constant 0 : index
      %c0_3 = arith.constant 0 : index
      %15 = vector.load %arg4[%c0, %c0_3] : memref<1x128xi32, #tpu.memory_space<vmem>>, vector<1x128xi32>
      %16 = vector.broadcast %15 : vector<1x128xi32> to vector<64x128xi32>
      %17 = arith.cmpi eq, %14, %16 : vector<64x128xi32>
      %18 = arith.extui %17 : vector<64x128xi1> to vector<64x128xi32>
      %19 = arith.sitofp %18 : vector<64x128xi32> to vector<64x128xf32>
      %20 = arith.truncf %19 : vector<64x128xf32> to vector<64x128xbf16>
      %c0_4 = arith.constant 0 : index
      %c0_5 = arith.constant 0 : index
      %21 = vector.load %arg10[%c0_4, %c0_5] : memref<64x128xf32, #tpu.memory_space<vmem>>, vector<64x128xf32>
      %c0_6 = arith.constant 0 : index
      %c0_7 = arith.constant 0 : index
      %22 = vector.load %arg5[%c0_6, %c0_7] : memref<128x128xbf16, #tpu.memory_space<vmem>>, vector<128x128xbf16>
      %cst = arith.constant dense<0.000000e+00> : vector<64x128xf32>
      %23 = tpu.matmul %20, %22, %cst {dimension_numbers = #tpu.dot_dimension_numbers<[1], [0], [0], [1], [0, 0, 1, 1], [], []>} : vector<64x128xbf16>, vector<128x128xbf16>, vector<64x128xf32> -> vector<64x128xf32>
      %24 = arith.addf %21, %23 : vector<64x128xf32>
      %c0_8 = arith.constant 0 : index
      %c0_9 = arith.constant 0 : index
      %25 = vector.load %arg10[%c0_8, %c0_9] : memref<64x128xf32, #tpu.memory_space<vmem>>, vector<64x128xf32>
      tpu.vector_store %arg10[%c0_8, %c0_9], %24 {strides = array<i32>} : memref<64x128xf32, #tpu.memory_space<vmem>>, vector<64x128xf32>,
    } else {
    }
    %c4_i32 = arith.constant 4 : i32
    %8 = arith.cmpi eq, %arg1, %c4_i32 : i32
    %9 = arith.extui %8 : i1 to i32
    %c0_i32_2 = arith.constant 0 : i32
    %10 = arith.cmpi ne, %9, %c0_i32_2 : i32
    scf.if %10 {
      %c0 = arith.constant 0 : index
      %c0_3 = arith.constant 0 : index
      %11 = vector.load %arg10[%c0, %c0_3] : memref<64x128xf32, #tpu.memory_space<vmem>>, vector<64x128xf32>
      %cst = arith.constant 0.000000e+00 : f32
      %12 = vector.broadcast %cst : f32 to vector<64x128xf32>
      %13 = arith.maximumf %11, %12 : vector<64x128xf32>
      %c0_4 = arith.constant 0 : index
      %c0_5 = arith.constant 0 : index
      %14 = vector.load %arg9[%c0_4, %c0_5] : memref<64x128xf32, #tpu.memory_space<vmem>>, vector<64x128xf32>
      tpu.vector_store %arg9[%c0_4, %c0_5], %13 {strides = array<i32>} : memref<64x128xf32, #tpu.memory_space<vmem>>, vector<64x128xf32>,
    } else {
    }
    return
  }
  func.func @transform_0(%arg0: i32, %arg1: i32, %arg2: memref<5xi32, #tpu.memory_space<smem>>, %arg3: memref<1xi32, #tpu.memory_space<smem>>) -> (i32, i32) {
    %c5_i32 = arith.constant 5 : i32
    %0 = arith.muli %arg0, %c5_i32 : i32
    %1 = arith.addi %0, %arg1 : i32
    %2 = arith.index_cast %1 : i32 to index
    %3 = memref.load %arg2[%2] : memref<5xi32, #tpu.memory_space<smem>>
    %c0_i32 = arith.constant 0 : i32
    %c0_i32_0 = arith.constant 0 : i32
    return %c0_i32, %3 : i32, i32
  }
  func.func @transform_1(%arg0: i32, %arg1: i32, %arg2: memref<5xi32, #tpu.memory_space<smem>>, %arg3: memref<1xi32, #tpu.memory_space<smem>>) -> (i32, i32) {
    %c5_i32 = arith.constant 5 : i32
    %0 = arith.muli %arg0, %c5_i32 : i32
    %1 = arith.addi %0, %arg1 : i32
    %2 = arith.index_cast %1 : i32 to index
    %3 = memref.load %arg2[%2] : memref<5xi32, #tpu.memory_space<smem>>
    %c0_i32 = arith.constant 0 : i32
    %c0_i32_0 = arith.constant 0 : i32
    return %3, %c0_i32 : i32, i32
  }
  func.func @transform_2(%arg0: i32, %arg1: i32, %arg2: memref<5xi32, #tpu.memory_space<smem>>, %arg3: memref<1xi32, #tpu.memory_space<smem>>) -> (i32, i32) {
    %c0_i32 = arith.constant 0 : i32
    %c0_i32_0 = arith.constant 0 : i32
    return %arg0, %c0_i32 : i32, i32
  }
  func.func @transform_3(%arg0: i32, %arg1: i32, %arg2: memref<5xi32, #tpu.memory_space<smem>>, %arg3: memref<1xi32, #tpu.memory_space<smem>>) -> (i32, i32) {
    %c0_i32 = arith.constant 0 : i32
    %c0_i32_0 = arith.constant 0 : i32
    %c0_i32_1 = arith.constant 0 : i32
    return %c0_i32, %c0_i32_0 : i32, i32
  }
  func.func @transform_4(%arg0: i32, %arg1: i32, %arg2: memref<5xi32, #tpu.memory_space<smem>>, %arg3: memref<1xi32, #tpu.memory_space<smem>>) -> (i32, i32) {
    %c0_i32 = arith.constant 0 : i32
    %c0_i32_0 = arith.constant 0 : i32
    %c0_i32_1 = arith.constant 0 : i32
    return %c0_i32, %c0_i32_0 : i32, i32
  }
  func.func @transform_5(%arg0: i32, %arg1: i32, %arg2: memref<5xi32, #tpu.memory_space<smem>>, %arg3: memref<1xi32, #tpu.memory_space<smem>>) -> (i32, i32) {
    %c0_i32 = arith.constant 0 : i32
    %c0_i32_0 = arith.constant 0 : i32
    return %arg0, %c0_i32 : i32, i32
  }
}

</mosaic_0001>

<bundles_post_ra>
// kernel: custom-call
= control target key start
LH: loop header
LB: loop body
LE: loop exit
PB: predicated region body
PF: predicated region fallthrough
CT: control target
= control target key end

     0   :  { %s6_s0 = inlined_call_operand.vmem [shape: u32[5], index: 0, kind: output, shape index: {}]  }

// kernel: rel_graph_conv_homo.2
= control target key start
LH: loop header
LB: loop body
LE: loop exit
PB: predicated region body
PF: predicated region fallthrough
CT: control target
= control target key end

     0   :  { %s995_s0 = inlined_call_operand.vmem [shape: s32[5], index: 0, kind: input, shape index: {}]   ;;  %s996_s1 = inlined_call_operand.vmem [shape: bf16[640,32], index: 1, kind: input, shape index: {}]   ;;  %s997_s2 = inlined_call_operand.vmem [shape: bf16[4,32,128], index: 2, kind: input, shape index: {}]   ;;  %s998_s3 = inlined_call_operand.vmem [shape: f32[640,1], index: 3, kind: input, shape index: {}]   ;;  %s999_s4 = inlined_call_operand.vmem [shape: bf16[640,128], index: 4, kind: output, shape index: {}]  }
   0x1   :  { %s9_s17 = sshll.u32 %s995_s0, 4  ;;  %s10_s17 = int_to_ptr.vmem [resolvable:$true] %s9_s17 }
   0x2   :  { %s866_s18 = scalar_lea.vmem %s10_s17, 16  ;;  %p871_p1 = scmp.lt.s32.totalorder %s10_s17, %s10_s17 }
   0x3   :  { %p867_p0 = scmp.ne.s32.totalorder %s10_s17, %s866_s18  ;;  %p872_p2 = scmp.lt.s32.totalorder %s866_s18, %s866_s18 }
   0x5   :  { %p873_p3 = por %p872_p2, %p871_p1 }
   0x7   :  { %p874_p4 = pnand %p873_p3, %p867_p0 }
   0x9   :  { %877 = shalt.err (!%p874_p4)  }
   0xa   :  { %s888_s19 = smov [#allocation3]  }
   0xb   :  { %12 = dma.vmem_to_smem %s10_s17, 16, %s888_s19, [#allocation2] }
   0xc   :  { %882 = dma.done.wait [#allocation2], 16 }
   0xd   :  { %883 = vsyncadd [#allocation2], 4294967280 }
   0xe   :  { %14 = sfence }
   0xf   :  { %s918_s20 = smov 0  }
  0x10 LB: > { %s697_s0 = sadd.s32 4294967295, %s886_s20   ;;  %p701_p5 = scmp.ge.s32.totalorder %s886_s20, 1  ;;  %s886_s20 = sphi %s918_s20, %s20_s20  }
  0x11   : > { %p170_p6 = scmp.lt.s32.totalorder %s886_s20, 6 }
  0x13   : > { %p171_p7 = pnand %p701_p5, %p170_p6 }
  0x14   : > { %s211_s21 = sld [smem:[#allocation3 + %s697_s0]] (!%p171_p7)  ;;  %s702_s22 = sshll.u32 (!%p171_p7), %s697_s0, 4 }
  0x15   : > { %174 = sbr.rel (%p171_p7) target bundleno = 252 (0xfc), region = 32  ;;  %p206_p8 = scmp.lt.s32.totalorder (!%p171_p7), %s702_s22, 79 }
  0x1a   : > { %v889_v0 = vmov 0   ;;  %s1001_s22 = smov (!%p206_p8, %s702_s22), 79  ;;  %p212_p9 = scmp.lt.s32.totalorder %s211_s21, 3  ;;  %vm303_vm0 = vcmask 261120  }
  0x1b   : > { %855 = vset.pattern.permute.xlu1 %v889_v0  ;;  %854 = vset.pattern.permute.xlu0 %v889_v0  ;;  %s703_s23 = sshll.u32 %s1001_s22, 2  ;;  %s707_s5 = sshll.u32 %s1001_s22, 3 }
  0x1c   : > { %s934_s26 = scalar_lea.vmem %s996_s1, %s703_s23  ;;  %s1003_s21 = smov (!%p212_p9, %s211_s21), 3 }
  0x1d   : > { %v858_v1 = vld [vmem:[%s934_s26] sm:$0xff]   ;;  %s746_s27 = sshll.u32 %s1003_s21, 4  ;;  %s947_s8 = scalar_lea.vmem %s998_s3, %s707_s5  ;;  %v860_v7 = vld [vmem:[%s934_s26 + $0x8] sm:$0xff]   ;;  %v862_v9 = vld [vmem:[%s934_s26 + $0x10] sm:$0xff]  }
  0x1e   : > { %v859_v2 = vld [vmem:[%s934_s26 + $0x20] sm:$0xff]   ;;  %824 = vmatprep.mubr.msk.bf16.mxu0 %vm303_vm0, %v858_v1  ;;  %s216_s30 = scalar_lea.vmem %s997_s2, %s746_s27  ;;  %v427_v5 = vld [vmem:[%s947_s8 + $0x10] sm:$0xff]  ;;  %v861_v8 = vld [vmem:[%s934_s26 + $0x28] sm:$0xff]   ;;  %s982_s11 = scalar_lea.vmem %s999_s4, %s703_s23 }
  0x1f   : > { %832 = vmatprep.mubr.msk.bf16.mxu1 %vm303_vm0, %v859_v2  ;;  %v856_v3 = vld [vmem:[%s216_s30 + $0x8] sm:$0xff]   ;;  %v857_v4 = vld [vmem:[%s216_s30] sm:$0xff]   ;;  %453 = vperm.xlu1 %855, %v427_v5   ;;  %v863_v10 = vld [vmem:[%s934_s26 + $0x30] sm:$0xff]  }
  0x20   : > { %820 = vmatprep.subr.bf16.mxu0 %v856_v3  ;;  %840 = vmatprep.subr.bf16.mxu1 %v856_v3  ;;  %v425_v6 = vld [vmem:[%s947_s8] sm:$0xff]  ;;  %v428_v11 = vld [vmem:[%s947_s8 + $0x18] sm:$0xff]  ;;  %v426_v12 = vld [vmem:[%s947_s8 + $0x8] sm:$0xff] }
  0x21   : > { %821 = vmatpush3.bf16.msra.mxu0 %v856_v3  ;;  %842 = vmatpush3.bf16.msra.mxu1 %v856_v3  ;;  %v430_v13 = vld [vmem:[%s947_s8 + $0x28] sm:$0xff]  ;;  %v429_v14 = vld [vmem:[%s947_s8 + $0x20] sm:$0xff]  ;;  %v864_v15 = vld [vmem:[%s934_s26 + $0x18] sm:$0xff]  }
  0x22   : > { %822 = vmatprep.subr.bf16.mxu0 %v857_v4  ;;  %841 = vmatprep.subr.bf16.mxu1 %v857_v4  ;;  %v865_v16 = vld [vmem:[%s934_s26 + $0x38] sm:$0xff]   ;;  %v431_v18 = vld [vmem:[%s947_s8 + $0x30] sm:$0xff]  ;;  %v434_v19 = vld [vmem:[%s947_s8 + $0x48] sm:$0xff] }
  0x23   : > { %443 = vperm.xlu0 %854, %v425_v6   ;;  %458 = vperm.xlu1 %855, %v428_v11   ;;  %v432_v17 = vld [vmem:[%s947_s8 + $0x38] sm:$0xff]  ;;  %v433_v20 = vld [vmem:[%s947_s8 + $0x40] sm:$0xff]  ;;  %v435_v22 = vld [vmem:[%s947_s8 + $0x50] sm:$0xff] }
  0x24   : > { %v436_v21 = vld [vmem:[%s947_s8 + $0x58] sm:$0xff]  ;;  %v438_v23 = vld [vmem:[%s947_s8 + $0x68] sm:$0xff]  ;;  %v437_v24 = vld [vmem:[%s947_s8 + $0x60] sm:$0xff] }
  0x25   : > { %823 = vmatpush3.bf16.msra.mxu0 %v857_v4  ;;  %843 = vmatpush3.bf16.msra.mxu1 %v857_v4  ;;  %v440_v25 = vld [vmem:[%s947_s8 + $0x78] sm:$0xff]  ;;  %v439_v26 = vld [vmem:[%s947_s8 + $0x70] sm:$0xff] }
  0x27   : > { %448 = vperm.xlu0 %854, %v426_v12   ;;  %468 = vperm.xlu1 %855, %v430_v13  }
  0x28   : > { %825 = vmatmul.mubr.msk.bf16.vlgmr.msra.gmra.mxu0 %vm303_vm0, %v860_v7  ;;  %833 = vmatmul.mubr.msk.bf16.vlgmr.msra.gmra.mxu1 %vm303_vm0, %v861_v8 }
  0x29   : > { %828 = vmatprep.mubr.msk.bf16.mxu0 %vm303_vm0, %v862_v9  ;;  %836 = vmatprep.mubr.msk.bf16.mxu1 %vm303_vm0, %v863_v10 }
  0x2b   : > { %463 = vperm.xlu0 %854, %v429_v14   ;;  %478 = vperm.xlu1 %855, %v432_v17  }
  0x2f   : > { %473 = vperm.xlu0 %854, %v431_v18   ;;  %488 = vperm.xlu1 %855, %v434_v19  }
  0x30   : > { %829 = vmatmul.mubr.msk.bf16.gmra.mxu0 %vm303_vm0, %v864_v15  ;;  %837 = vmatmul.mubr.msk.bf16.gmra.mxu1 %vm303_vm0, %v865_v16 }
  0x33   : > { %483 = vperm.xlu0 %854, %v433_v20   ;;  %498 = vperm.xlu1 %855, %v436_v21  }
  0x37   : > { %493 = vperm.xlu0 %854, %v435_v22   ;;  %508 = vperm.xlu1 %855, %v438_v23  }
  0x3b   : > { %503 = vperm.xlu0 %854, %v437_v24   ;;  %518 = vperm.xlu1 %855, %v440_v25  }
  0x3f   : > { %513 = vperm.xlu0 %854, %v439_v26  }
  0x9a   : > { %v454_v27 = vpop.permute.xlu1 %453 }
  0x9e   : > { %v444_v28 = vpop.permute.xlu0 %443  ;;  %v459_v29 = vpop.permute.xlu1 %458 }
  0xa2   : > { %v449_v30 = vpop.permute.xlu0 %448  ;;  %v469_v31 = vpop.permute.xlu1 %468 }
  0xa6   : > { %v464_v32 = vpop.permute.xlu0 %463  ;;  %v479_v33 = vpop.permute.xlu1 %478 }
  0xaa   : > { %v474_v34 = vpop.permute.xlu0 %473  ;;  %v489_v35 = vpop.permute.xlu1 %488 }
  0xae   : > { %v484_v36 = vpop.permute.xlu0 %483  ;;  %v499_v37 = vpop.permute.xlu1 %498 }
  0xb2   : > { %v494_v38 = vpop.permute.xlu0 %493  ;;  %v509_v45 = vpop.permute.xlu1 %508 }
  0xb6   : > { %v504_v46 = vpop.permute.xlu0 %503  ;;  %v519_v1 = vpop.permute.xlu1 %518 }
  0xba   : > { %v514_v2 = vpop.permute.xlu0 %513 }
  0xe8   : > { %v826_v39 = vpop.f32.mrf.mxu0  ;;  %v834_v40 = vpop.f32.mrf.mxu1 }
  0xe9   : > { %v523_v47 = vmul.f32 %v826_v39, %v454_v27  ;;  %v531_v48 = vmul.f32 %v834_v40, %v494_v38 }
  0xea   : > { %v362_v41 = vpop.f32.mrf.mxu0  ;;  %v394_v42 = vpop.f32.mrf.mxu1 }
  0xeb   : > { %v521_v51 = vmul.f32 %v444_v28, %v362_v41  ;;  %v529_v52 = vmul.f32 %v484_v36, %v394_v42 }
  0xec   : > { %v827_v43 = vpop.f32.mrf.mxu0  ;;  %v835_v44 = vpop.f32.mrf.mxu1 }
  0xed   : > { %v524_v49 = vmul.f32 %v827_v43, %v459_v29  ;;  %v532_v50 = vmul.f32 %v835_v44, %v499_v37 }
  0xee   : > { %v365_v53 = vpop.f32.mrf.mxu0  ;;  %v397_v54 = vpop.f32.mrf.mxu1 }
  0xef   : > { %v771_v55 = vpack.c.bf16 %v524_v49, %v523_v47  ;;  %v791_v56 = vpack.c.bf16 %v532_v50, %v531_v48  ;;  %v522_v57 = vmul.f32 %v449_v30, %v365_v53  ;;  %v530_v58 = vmul.f32 %v489_v35, %v397_v54 }
  0xf0   : > { %v830_v59 = vpop.f32.mrf.mxu0  ;;  %v838_v60 = vpop.f32.mrf.mxu1 }
  0xf1   : > { %803 = vst [vmem:[%s982_s11 + $0x8] sm:$0xff] %v771_v55   ;;  %807 = vst [vmem:[%s982_s11 + $0x28] sm:$0xff] %v791_v56   ;;  %v766_v61 = vpack.c.bf16 %v522_v57, %v521_v51  ;;  %v786_v62 = vpack.c.bf16 %v530_v58, %v529_v52  ;;  %v527_v5 = vmul.f32 %v830_v59, %v474_v34 }
  0xf2   : > { %v378_v63 = vpop.f32.mrf.mxu0  ;;  %v410_v0 = vpop.f32.mrf.mxu1  ;;  %v535_v6 = vmul.f32 %v838_v60, %v514_v2 }
  0xf3   : > { %767 = vst [vmem:[%s982_s11] sm:$0xff] %v766_v61   ;;  %806 = vst [vmem:[%s982_s11 + $0x20] sm:$0xff] %v786_v62   ;;  %v525_v9 = vmul.f32 %v464_v32, %v378_v63  ;;  %v533_v10 = vmul.f32 %v504_v46, %v410_v0 }
  0xf4   : > { %v831_v3 = vpop.f32.mrf.mxu0  ;;  %v839_v4 = vpop.f32.mrf.mxu1 }
  0xf5   : > { %v528_v7 = vmul.f32 %v831_v3, %v479_v33  ;;  %v536_v8 = vmul.f32 %v839_v4, %v519_v1 }
  0xf6   : > { %v381_v11 = vpop.f32.mrf.mxu0  ;;  %v413_v12 = vpop.f32.mrf.mxu1 }
  0xf7   : > { %v781_v13 = vpack.c.bf16 %v528_v7, %v527_v5  ;;  %v801_v14 = vpack.c.bf16 %v536_v8, %v535_v6  ;;  %v526_v15 = vmul.f32 %v469_v31, %v381_v11  ;;  %v534_v16 = vmul.f32 %v509_v45, %v413_v12 }
  0xf9   : > { %805 = vst [vmem:[%s982_s11 + $0x18] sm:$0xff] %v781_v13   ;;  %809 = vst [vmem:[%s982_s11 + $0x38] sm:$0xff] %v801_v14   ;;  %v776_v17 = vpack.c.bf16 %v526_v15, %v525_v9  ;;  %v796_v18 = vpack.c.bf16 %v534_v16, %v533_v10 }
  0xfb   : > { %804 = vst [vmem:[%s982_s11 + $0x10] sm:$0xff] %v776_v17   ;;  %808 = vst [vmem:[%s982_s11 + $0x30] sm:$0xff] %v796_v18  }
  0xfc PF: > { %s20_s20 = sadd.s32 1, %s886_s20  }
  0xfd   : > { %p17_p10 = scmp.ge.s32.totalorder %s20_s20, 7  }
  0xff   :  { %19 = sbr.rel (!%p17_p10) target bundleno = 16 (0x10), region = 68 }

// kernel: rel_graph_conv_homo.3
= control target key start
LH: loop header
LB: loop body
LE: loop exit
PB: predicated region body
PF: predicated region fallthrough
CT: control target
= control target key end

     0   :  { %s1146_s0 = inlined_call_operand.vmem [shape: s32[5], index: 0, kind: input, shape index: {}]   ;;  %s1147_s1 = inlined_call_operand.<no memory space> [shape: s32[1], index: 1, kind: input, shape index: {}]   ;;  %s1148_s2 = inlined_call_operand.vmem [shape: s32[1,640], index: 2, kind: input, shape index: {}]   ;;  %s1149_s3 = inlined_call_operand.vmem [shape: bf16[640,128], index: 3, kind: input, shape index: {}]   ;;  %s1150_s4 = inlined_call_operand.vmem [shape: bf16[64,32], index: 4, kind: input, shape index: {}]   ;;  %s1151_s5 = inlined_call_operand.vmem [shape: bf16[32,128], index: 5, kind: input, shape index: {}]   ;;  %s1152_s6 = inlined_call_operand.vmem [shape: f32[1,128], index: 6, kind: input, shape index: {}]   ;;  %s1153_s7 = inlined_call_operand.vmem [shape: f32[64,128], index: 7, kind: output, shape index: {}]  }
   0x1   :  { %s12_s26 = sshll.u32 %s1146_s0, 4  ;;  %16 = sst [smem:[#allocation5]] %s1147_s1  ;;  %s13_s26 = int_to_ptr.vmem [resolvable:$true] %s12_s26 }
   0x2   :  { %s957_s29 = scalar_lea.vmem %s13_s26, 16  ;;  %p962_p1 = scmp.lt.s32.totalorder %s13_s26, %s13_s26 }
   0x3   :  { %p958_p0 = scmp.ne.s32.totalorder %s13_s26, %s957_s29  ;;  %p963_p2 = scmp.lt.s32.totalorder %s957_s29, %s957_s29 }
   0x5   :  { %p964_p3 = por %p963_p2, %p962_p1 }
   0x7   :  { %p965_p4 = pnand %p964_p3, %p958_p0 }
   0x9   :  { %968 = shalt.err (!%p965_p4)  }
   0xa   :  { %s995_s30 = smov [#allocation4]  }
   0xb   :  { %15 = dma.vmem_to_smem %s13_s26, 16, %s995_s30, [#allocation3] }
   0xc   :  { %981 = dma.done.wait [#allocation3], 16 }
   0xd   :  { %982 = vsyncadd [#allocation3], 4294967280 }
   0xe   :  { %18 = sfence }
   0xf   :  { %s1043_s8 = smov 0   ;;  %s1045_s0 = smov 0  }
  0x10   :  { %s1047_s9 = smov 0  }
  0x11 LB: > { %s33_s1 = sadd.s32 1, %s989_s0  ;;  %p797_p5 = scmp.ge.s32.totalorder %s993_s9, 1  ;;  %s993_s9 = sphi %s1047_s9, %s24_s9   ;;  %s989_s0 = sphi %s1045_s0, %s1155_s0   ;;  %s985_s8 = sphi %s1043_s8, %s1154_s8  }
  0x12   : > { %p34_p6 = scmp.ge.s32.totalorder %s33_s1, 5  ;;  %p252_p7 = scmp.lt.s32.totalorder %s993_s9, 6 }
  0x14   : > { %s1157_s1 = smov (%p34_p6, %s33_s1), 0  ;;  %p253_p8 = pnand %p797_p5, %p252_p7 }
  0x15   : > { %s296_s10 = sld [smem:[#allocation4 + %s985_s8]] (!%p253_p8)  ;;  %p800_p11 = scmp.ne.s32.totalorder (!%p253_p8), %s985_s8, 0 }
  0x16   : > { %256 = sbr.rel (%p253_p8) target bundleno = 508 (0x1fc), region = 40  ;;  %s305_s11 = sld [smem:[#allocation4 + %s985_s8]] (!%p253_p8) }
  0x1b   : > { %p297_p9 = scmp.lt.s32.totalorder %s296_s10, 4 }
  0x1c   : > { %s798_s12 = sshll.u32 %s305_s11, 4 }
  0x1d   : > { %s1159_s10 = smov (!%p297_p9, %s296_s10), 4  ;;  %p307_p10 = scmp.lt.s32.totalorder %s798_s12, 79 }
  0x1e   : > { %s299_s15 = scalar_lea.vmem %s1148_s2, %s1159_s10  ;;  %331 = sbr.rel (%p800_p11) target bundleno = 246 (0xf6), region = 44 }
  0x1f   : > { %s1161_s12 = smov (!%p307_p10, %s798_s12), 79 }
  0x20   : > { %s799_s16 = sshll.u32 %s1161_s12, 2 }
  0x21   : > { %s1074_s19 = scalar_lea.vmem %s1149_s3, %s799_s16 }
  0x23   : > { %v943_v0 = vld [vmem:[%s1151_s5 + $0x8] sm:$0xff]   ;;  %v944_v1 = vld [vmem:[%s1151_s5] sm:$0xff]   ;;  %vm383_vm0 = vcmask 261120   ;;  %v946_v3 = vld [vmem:[%s1150_s4 + $0x10] sm:$0xff]  }
  0x24   : > { %861 = vmatprep.subr.bf16.mxu0 %v943_v0  ;;  %897 = vmatprep.subr.bf16.mxu1 %v943_v0  ;;  %v945_v2 = vld [vmem:[%s1150_s4] sm:$0xff]   ;;  %v947_v4 = vld [vmem:[%s1150_s4 + $0x8] sm:$0xff]   ;;  %v948_v5 = vld [vmem:[%s1150_s4 + $0x18] sm:$0xff]  }
  0x25   : > { %862 = vmatpush3.bf16.msra.mxu0 %v943_v0  ;;  %899 = vmatpush3.bf16.msra.mxu1 %v943_v0  ;;  %v801_v6 = vld [vmem:[%s1152_s6] ss:$0 sm:$0xff] }
  0x26   : > { %863 = vmatprep.subr.bf16.mxu0 %v944_v1  ;;  %898 = vmatprep.subr.bf16.mxu1 %v944_v1 }
  0x27   : > { %865 = vmatprep.mubr.msk.bf16.mxu0 %vm383_vm0, %v945_v2  ;;  %869 = vmatprep.mubr.msk.bf16.mxu1 %vm383_vm0, %v946_v3 }
  0x29   : > { %864 = vmatpush3.bf16.msra.mxu0 %v944_v1  ;;  %900 = vmatpush3.bf16.msra.mxu1 %v944_v1 }
  0x2c   : > { %866 = vmatmul.mubr.msk.bf16.vlgmr.msra.gmra.mxu0 %vm383_vm0, %v947_v4  ;;  %870 = vmatmul.mubr.msk.bf16.vlgmr.msra.gmra.mxu1 %vm383_vm0, %v948_v5 }
  0xec   : > { %v867_v7 = vpop.f32.mrf.mxu0  ;;  %v871_v8 = vpop.f32.mrf.mxu1 }
  0xed   : > { %v439_v9 = vadd.f32 %v867_v7, %v801_v6  ;;  %v455_v10 = vadd.f32 %v871_v8, %v801_v6 }
  0xee   : > { %v430_v11 = vpop.f32.mrf.mxu0  ;;  %v446_v12 = vpop.f32.mrf.mxu1 }
  0xef   : > { %463 = vst [vmem:[#allocation2 + $0x18] sm:$0xff] %v439_v9  ;;  %467 = vst [vmem:[#allocation2 + $0x28] sm:$0xff] %v455_v10  ;;  %v431_v13 = vadd.f32 %v801_v6, %v430_v11  ;;  %v447_v14 = vadd.f32 %v801_v6, %v446_v12 }
  0xf0   : > { %v868_v15 = vpop.f32.mrf.mxu0  ;;  %v872_v16 = vpop.f32.mrf.mxu1 }
  0xf1   : > { %461 = vst [vmem:[#allocation2 + $0x30] sm:$0xff] %v431_v13  ;;  %465 = vst [vmem:[#allocation2 + $0x8] sm:$0xff] %v447_v14  ;;  %v442_v17 = vadd.f32 %v868_v15, %v801_v6  ;;  %v458_v18 = vadd.f32 %v872_v16, %v801_v6 }
  0xf2   : > { %v433_v19 = vpop.f32.mrf.mxu0  ;;  %v449_v20 = vpop.f32.mrf.mxu1 }
  0xf3   : > { %464 = vst [vmem:[#allocation2 + $0x10] sm:$0xff] %v442_v17  ;;  %468 = vst [vmem:[#allocation2 + $0x38] sm:$0xff] %v458_v18  ;;  %v434_v21 = vadd.f32 %v801_v6, %v433_v19  ;;  %v450_v22 = vadd.f32 %v801_v6, %v449_v20 }
  0xf5   : > { %462 = vst [vmem:[#allocation2] sm:$0xff] %v434_v21  ;;  %466 = vst [vmem:[#allocation2 + $0x20] sm:$0xff] %v450_v22 }
  0xf6 PF: > { %s469_s14 = sld [smem:[#allocation5]] }
  0xfc   : > { %p812_p12 = scmp.ge.s32.totalorder %s985_s8, %s469_s14 }
  0xfe   : > { %473 = sbr.rel (%p812_p12) target bundleno = 494 (0x1ee), region = 48 }
 0x103   : > { %v949_v23 = vld [vmem:[%s1074_s19 + $0x38] sm:$0xff]   ;;  %v475_v24 = vlaneseq  ;;  %v950_v25 = vld [vmem:[%s1074_s19 + $0x30] sm:$0xff]   ;;  %v951_v27 = vld [vmem:[%s1074_s19 + $0x28] sm:$0xff]   ;;  %v996_v34 = vmov 1.0|1.0  }
 0x104   : > { %873 = vmatprep.subr.bf16.mxu0 %v949_v23  ;;  %901 = vmatprep.subr.bf16.mxu1 %v949_v23  ;;  %v952_v31 = vld [vmem:[%s1074_s19 + $0x20] sm:$0xff]   ;;  %v953_v33 = vld [vmem:[%s1074_s19 + $0x18] sm:$0xff]   ;;  %v954_v35 = vld [vmem:[%s1074_s19 + $0x10] sm:$0xff]  }
 0x105   : > { %v476_v26 = vshrl.u32 %v475_v24, 7  ;;  %874 = vmatpush3.bf16.msra.mxu0 %v949_v23  ;;  %909 = vmatpush3.bf16.msra.mxu1 %v949_v23  ;;  %v813_v32 = vld [vmem:[%s299_s15] ss:$0 sm:$0xff]  ;;  %v955_v36 = vld [vmem:[%s1074_s19 + $0x8] sm:$0xff]   ;;  %v528_v42 = vld [vmem:[#allocation2 + $0x18] sm:$0xff] }
 0x106   : > { %875 = vmatprep.subr.bf16.mxu0 %v950_v25  ;;  %902 = vmatprep.subr.bf16.mxu1 %v950_v25  ;;  %v956_v39 = vld [vmem:[%s1074_s19] sm:$0xff]   ;;  %v532_v43 = vld [vmem:[#allocation2 + $0x28] sm:$0xff]  ;;  %v526_v46 = vld [vmem:[#allocation2 + $0x30] sm:$0xff] }
 0x107   : > { %v477_v28 = vadd.s32 8, %v476_v26  ;;  %v480_v29 = vadd.s32 32, %v476_v26  ;;  %v481_v30 = vadd.s32 40, %v476_v26  ;;  %vm498_vm1 = vcmp.eq.s32.totalorder %v476_v26, %v813_v32  ;;  %v530_v47 = vld [vmem:[#allocation2 + $0x8] sm:$0xff]  ;;  %v529_v52 = vld [vmem:[#allocation2 + $0x10] sm:$0xff]  ;;  %v533_v53 = vld [vmem:[#allocation2 + $0x38] sm:$0xff] }
 0x108   : > { %v478_v37 = vadd.s32 16, %v476_v26  ;;  %v479_v38 = vadd.s32 24, %v476_v26  ;;  %v482_v40 = vadd.s32 48, %v476_v26  ;;  %v483_v41 = vadd.s32 56, %v476_v26  ;;  %v527_v58 = vld [vmem:[#allocation2] sm:$0xff] }
 0x109   : > { %876 = vmatpush3.bf16.msra.mxu0 %v950_v25  ;;  %910 = vmatpush3.bf16.msra.mxu1 %v950_v25  ;;  %vm499_vm2 = vcmp.eq.s32.totalorder %v477_v28, %v813_v32  ;;  %vm502_vm3 = vcmp.eq.s32.totalorder %v480_v29, %v813_v32  ;;  %vm503_vm4 = vcmp.eq.s32.totalorder %v481_v30, %v813_v32  ;;  %v531_v59 = vld [vmem:[#allocation2 + $0x20] sm:$0xff] }
 0x10a   : > { %877 = vmatprep.subr.bf16.mxu0 %v951_v27  ;;  %903 = vmatprep.subr.bf16.mxu1 %v951_v27  ;;  %vm830_vm5 = vmpackc.low %vm499_vm2, %vm498_vm1  ;;  %vm500_vm7 = vcmp.eq.s32.totalorder %v478_v37, %v813_v32  ;;  %vm501_vm8 = vcmp.eq.s32.totalorder %v479_v38, %v813_v32  ;;  %vm504_vm9 = vcmp.eq.s32.totalorder %v482_v40, %v813_v32 }
 0x10b   : > { %vm834_vm6 = vmpackc.low %vm503_vm4, %vm502_vm3  ;;  %889 = vmatprep.mubr.msk.bf16.mxu0 %vm830_vm5, %v996_v34  ;;  %vm505_vm10 = vcmp.eq.s32.totalorder %v483_v41, %v813_v32 }
 0x10c   : > { %893 = vmatprep.mubr.msk.bf16.mxu1 %vm834_vm6, %v996_v34  ;;  %vm832_vm11 = vmpackc.low %vm501_vm8, %vm500_vm7 }
 0x10d   : > { %878 = vmatpush3.bf16.msra.mxu0 %v951_v27  ;;  %911 = vmatpush3.bf16.msra.mxu1 %v951_v27  ;;  %vm836_vm12 = vmpackc.low %vm505_vm10, %vm504_vm9 }
 0x10e   : > { %879 = vmatprep.subr.bf16.mxu0 %v952_v31  ;;  %904 = vmatprep.subr.bf16.mxu1 %v952_v31 }
 0x111   : > { %880 = vmatpush3.bf16.msra.mxu0 %v952_v31  ;;  %912 = vmatpush3.bf16.msra.mxu1 %v952_v31 }
 0x112   : > { %881 = vmatprep.subr.bf16.mxu0 %v953_v33  ;;  %905 = vmatprep.subr.bf16.mxu1 %v953_v33 }
 0x115   : > { %882 = vmatpush3.bf16.msra.mxu0 %v953_v33  ;;  %913 = vmatpush3.bf16.msra.mxu1 %v953_v33 }
 0x116   : > { %883 = vmatprep.subr.bf16.mxu0 %v954_v35  ;;  %906 = vmatprep.subr.bf16.mxu1 %v954_v35 }
 0x119   : > { %884 = vmatpush3.bf16.msra.mxu0 %v954_v35  ;;  %914 = vmatpush3.bf16.msra.mxu1 %v954_v35 }
 0x11a   : > { %885 = vmatprep.subr.bf16.mxu0 %v955_v36  ;;  %907 = vmatprep.subr.bf16.mxu1 %v955_v36 }
 0x11d   : > { %886 = vmatpush3.bf16.msra.mxu0 %v955_v36  ;;  %915 = vmatpush3.bf16.msra.mxu1 %v955_v36 }
 0x11e   : > { %887 = vmatprep.subr.bf16.mxu0 %v956_v39  ;;  %908 = vmatprep.subr.bf16.mxu1 %v956_v39 }
 0x121   : > { %888 = vmatpush3.bf16.msra.mxu0 %v956_v39  ;;  %916 = vmatpush3.bf16.msra.mxu1 %v956_v39 }
 0x124   : > { %890 = vmatmul.mubr.msk.bf16.vlgmr.msra.gmra.mxu0 %vm832_vm11, %v996_v34  ;;  %894 = vmatmul.mubr.msk.bf16.vlgmr.msra.gmra.mxu1 %vm836_vm12, %v996_v34 }
 0x1e4   : > { %v891_v44 = vpop.f32.mrf.mxu0  ;;  %v895_v45 = vpop.f32.mrf.mxu1 }
 0x1e5   : > { %v665_v48 = vadd.f32 %v891_v44, %v528_v42  ;;  %v669_v49 = vadd.f32 %v895_v45, %v532_v43 }
 0x1e6   : > { %v632_v50 = vpop.f32.mrf.mxu0  ;;  %v648_v51 = vpop.f32.mrf.mxu1 }
 0x1e7   : > { %673 = vst [vmem:[#allocation2 + $0x18] sm:$0xff] %v665_v48  ;;  %677 = vst [vmem:[#allocation2 + $0x28] sm:$0xff] %v669_v49  ;;  %v663_v54 = vadd.f32 %v632_v50, %v526_v46  ;;  %v667_v55 = vadd.f32 %v648_v51, %v530_v47 }
 0x1e8   : > { %v892_v56 = vpop.f32.mrf.mxu0  ;;  %v896_v57 = vpop.f32.mrf.mxu1 }
 0x1e9   : > { %671 = vst [vmem:[#allocation2 + $0x30] sm:$0xff] %v663_v54  ;;  %675 = vst [vmem:[#allocation2 + $0x8] sm:$0xff] %v667_v55  ;;  %v666_v60 = vadd.f32 %v892_v56, %v529_v52  ;;  %v670_v61 = vadd.f32 %v896_v57, %v533_v53 }
 0x1ea   : > { %v635_v62 = vpop.f32.mrf.mxu0  ;;  %v651_v63 = vpop.f32.mrf.mxu1 }
 0x1eb   : > { %674 = vst [vmem:[#allocation2 + $0x10] sm:$0xff] %v666_v60  ;;  %678 = vst [vmem:[#allocation2 + $0x38] sm:$0xff] %v670_v61  ;;  %v664_v0 = vadd.f32 %v635_v62, %v527_v58  ;;  %v668_v1 = vadd.f32 %v651_v63, %v531_v59 }
 0x1ed   : > { %672 = vst [vmem:[#allocation2] sm:$0xff] %v664_v0  ;;  %676 = vst [vmem:[#allocation2 + $0x20] sm:$0xff] %v668_v1 }
 0x1ee PF: > { %p838_p13 = scmp.ne.s32.totalorder %s985_s8, 4 }
 0x1f0   : > { %682 = sbr.rel (%p838_p13) target bundleno = 508 (0x1fc), region = 52 }
 0x1f5   : > { %v683_v2 = vld [vmem:[#allocation2 + $0x30] sm:$0xff]  ;;  %v684_v3 = vld [vmem:[#allocation2] sm:$0xff]  ;;  %v685_v4 = vld [vmem:[#allocation2 + $0x18] sm:$0xff] }
 0x1f6   : > { %v691_v5 = vmax.f32 %v683_v2, 0.0  ;;  %v692_v6 = vmax.f32 %v684_v3, 0.0  ;;  %v693_v7 = vmax.f32 %v685_v4, 0.0  ;;  %v686_v8 = vld [vmem:[#allocation2 + $0x10] sm:$0xff]  ;;  %v687_v9 = vld [vmem:[#allocation2 + $0x8] sm:$0xff]  ;;  %v688_v10 = vld [vmem:[#allocation2 + $0x20] sm:$0xff] }
 0x1f7   : > { %v694_v11 = vmax.f32 %v686_v8, 0.0  ;;  %v695_v12 = vmax.f32 %v687_v9, 0.0  ;;  %v696_v13 = vmax.f32 %v688_v10, 0.0  ;;  %v689_v14 = vld [vmem:[#allocation2 + $0x28] sm:$0xff]  ;;  %v690_v15 = vld [vmem:[#allocation2 + $0x38] sm:$0xff] }
 0x1f8   : > { %699 = vst [vmem:[%s1153_s7] sm:$0xff] %v691_v5  ;;  %700 = vst [vmem:[%s1153_s7 + $0x8] sm:$0xff] %v692_v6  ;;  %v697_v16 = vmax.f32 %v689_v14, 0.0  ;;  %v698_v17 = vmax.f32 %v690_v15, 0.0 }
 0x1f9   : > { %701 = vst [vmem:[%s1153_s7 + $0x10] sm:$0xff] %v693_v7  ;;  %702 = vst [vmem:[%s1153_s7 + $0x18] sm:$0xff] %v694_v11 }
 0x1fa   : > { %703 = vst [vmem:[%s1153_s7 + $0x20] sm:$0xff] %v695_v12  ;;  %704 = vst [vmem:[%s1153_s7 + $0x28] sm:$0xff] %v696_v13 }
 0x1fb   : > { %705 = vst [vmem:[%s1153_s7 + $0x30] sm:$0xff] %v697_v16  ;;  %706 = vst [vmem:[%s1153_s7 + $0x38] sm:$0xff] %v698_v17 }
 0x1fc PF: > { %s24_s9 = sadd.s32 1, %s993_s9   ;;  %s1154_s8 = smov %s989_s0 }
 0x1fd   : > { %p21_p0 = scmp.ge.s32.totalorder %s24_s9, 7   ;;  %s1155_s0 = smov %s1157_s1 }
 0x1ff   :  { %23 = sbr.rel (!%p21_p0) target bundleno = 17 (0x11), region = 88 }

</bundles_post_ra>
